<compile_context>
chip_gen: v7x
topology: tpu7x:2x2x1
jax: 0.10.0
libtpu: 0.0.40
codegen_flags: <defaults>
</compile_context>

<pallas_src>
import functools

import jax
import jax.numpy as jnp
from jax.experimental import pallas as pl
from jax.experimental.pallas import tpu as pltpu

_LANES = 128
_SUBLANES = 8
# 4 * 512 * 128 * 4B = 1 MiB packed-input block (+256 KiB output block),
# double-buffered well under VMEM limits on v5e/v6e/v7x.
_MAX_BLOCK_ROWS = 512


def _irt_kernel(x_ref, out_ref, *, value_range, a_range, D):
    """x_ref: (4, block_rows, 128) f32 packed [theta, a, b, c]; out: (block_rows, 128)."""
    x = x_ref[...]
    theta, a, b, c = x[0], x[1], x[2], x[3]

    # sigmoid(z) = 0.5 * (1 + tanh(z/2)) : one EUP op, no divide.
    c = 0.5 * (1.0 + jnp.tanh(0.5 * c))

    if value_range is not None:
        # value_range * (sigmoid(z) - 0.5) == 0.5 * value_range * tanh(z/2)
        theta = (0.5 * value_range) * jnp.tanh(0.5 * theta)
        b = (0.5 * value_range) * jnp.tanh(0.5 * b)

    if a_range is not None:
        a = a_range * (0.5 * (1.0 + jnp.tanh(0.5 * a)))
    else:
        # overflow-safe softplus: max(a, 0) + log1p(exp(-|a|))
        a = jnp.maximum(a, 0.0) + jnp.log1p(jnp.exp(-jnp.abs(a)))

    # 3PL: c + (1-c)/(1+exp(-z)) == c + (1-c) * sigmoid(z)
    z = D * a * (theta - b)
    out_ref[...] = c + (1.0 - c) * (0.5 * (1.0 + jnp.tanh(0.5 * z)))


def irtnet_forward(user, item, params, *, value_range, a_range, D=1.702):
    """JAX/Pallas equivalent of IRTNet.forward.

    user, item: int32 index vectors of identical shape (B,).
    params: dict with 'theta' (user_num, 1), 'a'/'b'/'c' (item_num, 1).
    Returns f32 vector of shape (B,).
    """
    assert user.shape == item.shape and user.ndim == 1
    B = user.shape[0]

    # Embedding lookups (dim-1 embeddings) -- glue-only indexing.
    theta_g = params["theta"][user, 0].astype(jnp.float32)
    a_g = params["a"][item, 0].astype(jnp.float32)
    b_g = params["b"][item, 0].astype(jnp.float32)
    c_g = params["c"][item, 0].astype(jnp.float32)

    # TODO(synk): PyTorch raises ValueError when theta/a/b contain NaN; raising
    # is not expressible in-kernel -- callers may check jnp.isnan outside.

    # Lane-dense layout: (rows, 128), rows padded to a multiple of the block.
    rows = pl.cdiv(B, _LANES)
    rows8 = _SUBLANES * pl.cdiv(rows, _SUBLANES)
    block_rows = min(_MAX_BLOCK_ROWS, rows8)
    rows_padded = block_rows * pl.cdiv(rows8, block_rows)
    padded_elems = rows_padded * _LANES

    packed = jnp.stack([theta_g, a_g, b_g, c_g])                # (4, B)
    packed = jnp.pad(packed, ((0, 0), (0, padded_elems - B)))   # (4, padded)
    packed = packed.reshape(4, rows_padded, _LANES)

    kernel = functools.partial(
        _irt_kernel, value_range=value_range, a_range=a_range, D=D
    )

    out = pl.pallas_call(
        kernel,
        out_shape=jax.ShapeDtypeStruct((rows_padded, _LANES), jnp.float32),
        grid=(rows_padded // block_rows,),
        in_specs=[pl.BlockSpec((4, block_rows, _LANES), lambda i: (0, i, 0))],
        out_specs=pl.BlockSpec((block_rows, _LANES), lambda i: (i, 0)),
        compiler_params=pltpu.CompilerParams(
            dimension_semantics=("parallel",)
        ),
    )(packed)
    return out.reshape(-1)[:B]


def _reference(user, item, params, *, value_range, a_range, D=1.702):
    theta = params["theta"][user, 0].astype(jnp.float32)
    a = params["a"][item, 0].astype(jnp.float32)
    b = params["b"][item, 0].astype(jnp.float32)
    c = params["c"][item, 0].astype(jnp.float32)
    c = jax.nn.sigmoid(c)
    if value_range is not None:
        theta = value_range * (jax.nn.sigmoid(theta) - 0.5)
        b = value_range * (jax.nn.sigmoid(b) - 0.5)
    if a_range is not None:
        a = a_range * jax.nn.sigmoid(a)
    else:
        a = jax.nn.softplus(a)
    return c + (1 - c) / (1 + jnp.exp(-D * a * (theta - b)))


if __name__ == "__main__":
    user_num, item_num = 16, 16
    value_range, a_range = 4.0, 1.0

    key = jax.random.PRNGKey(0)
    k_theta, k_a, k_b, k_c, k_u, k_i = jax.random.split(key, 6)
    # nn.Embedding default init: N(0, 1)
    params = {
        "theta": jax.random.normal(k_theta, (user_num, 1), jnp.float32),
        "a": jax.random.normal(k_a, (item_num, 1), jnp.float32),
        "b": jax.random.normal(k_b, (item_num, 1), jnp.float32),
        "c": jax.random.normal(k_c, (item_num, 1), jnp.float32),
    }

    # --- small batch (matches original demo) ---
    batch = 8
    user = jax.random.randint(k_u, (batch,), 0, user_num, dtype=jnp.int32)
    item = jax.random.randint(k_i, (batch,), 0, item_num, dtype=jnp.int32)

    out = irtnet_forward(
        user, item, params, value_range=value_range, a_range=a_range
    )
    out = jax.block_until_ready(out)
    ref = _reference(
        user, item, params, value_range=value_range, a_range=a_range
    )
    assert out.shape == (batch,)
    assert jnp.allclose(out, ref, atol=1e-5, rtol=1e-5)

    # --- larger batch: exercises multi-row layout + padding + grid ---
    batch2 = 300
    k_u2, k_i2 = jax.random.split(jax.random.PRNGKey(1), 2)
    user2 = jax.random.randint(k_u2, (batch2,), 0, user_num, dtype=jnp.int32)
    item2 = jax.random.randint(k_i2, (batch2,), 0, item_num, dtype=jnp.int32)

    out2 = jax.block_until_ready(
        irtnet_forward(
            user2, item2, params, value_range=value_range, a_range=a_range
        )
    )
    ref2 = _reference(
        user2, item2, params, value_range=value_range, a_range=a_range
    )
    assert out2.shape == (batch2,)
    assert jnp.allclose(out2, ref2, atol=1e-5, rtol=1e-5)

    # --- a_range=None branch (softplus path) ---
    out3 = jax.block_until_ready(
        irtnet_forward(
            user2, item2, params, value_range=value_range, a_range=None
        )
    )
    ref3 = _reference(
        user2, item2, params, value_range=value_range, a_range=None
    )
    assert jnp.allclose(out3, ref3, atol=1e-5, rtol=1e-5)

    print("KERNEL_OK")
</pallas_src>

<mosaic_0001>
module attributes {stable_mosaic.version = 11 : i64} {
  func.func @_irt_kernel(%arg0: i32, %arg1: memref<4x8x128xf32, #tpu.memory_space<vmem>>, %arg2: memref<8x128xf32, #tpu.memory_space<vmem>>) attributes {dimension_semantics = [#tpu.dimension_semantics<parallel>], iteration_bounds = array<i64: 1>, scalar_prefetch = 0 : i64, scratch_operands = 0 : i64, tpu.core_type = #tpu.core_type<tc>, window_params = [{transform_indices = @transform_0, window_bounds = array<i64: 4, 8, 128>}, {transform_indices = @transform_1, window_bounds = array<i64: 8, 128>}]} {
    %c0 = arith.constant 0 : index
    %c0_0 = arith.constant 0 : index
    %c0_1 = arith.constant 0 : index
    %0 = vector.load %arg1[%c0, %c0_0, %c0_1] : memref<4x8x128xf32, #tpu.memory_space<vmem>>, vector<4x8x128xf32>
    %1 = vector.extract_strided_slice %0 {offsets = [0, 0, 0], sizes = [1, 8, 128], strides = [1, 1, 1]} : vector<4x8x128xf32> to vector<1x8x128xf32>
    %2 = vector.shape_cast %1 : vector<1x8x128xf32> to vector<8x128xf32>
    %3 = vector.extract_strided_slice %0 {offsets = [1, 0, 0], sizes = [1, 8, 128], strides = [1, 1, 1]} : vector<4x8x128xf32> to vector<1x8x128xf32>
    %4 = vector.shape_cast %3 : vector<1x8x128xf32> to vector<8x128xf32>
    %5 = vector.extract_strided_slice %0 {offsets = [2, 0, 0], sizes = [1, 8, 128], strides = [1, 1, 1]} : vector<4x8x128xf32> to vector<1x8x128xf32>
    %6 = vector.shape_cast %5 : vector<1x8x128xf32> to vector<8x128xf32>
    %7 = vector.extract_strided_slice %0 {offsets = [3, 0, 0], sizes = [1, 8, 128], strides = [1, 1, 1]} : vector<4x8x128xf32> to vector<1x8x128xf32>
    %8 = vector.shape_cast %7 : vector<1x8x128xf32> to vector<8x128xf32>
    %cst = arith.constant 5.000000e-01 : f32
    %9 = vector.broadcast %cst : f32 to vector<8x128xf32>
    %10 = arith.mulf %9, %8 : vector<8x128xf32>
    %11 = math.tanh %10 : vector<8x128xf32>
    %cst_2 = arith.constant 1.000000e+00 : f32
    %12 = vector.broadcast %cst_2 : f32 to vector<8x128xf32>
    %13 = arith.addf %12, %11 : vector<8x128xf32>
    %cst_3 = arith.constant 5.000000e-01 : f32
    %14 = vector.broadcast %cst_3 : f32 to vector<8x128xf32>
    %15 = arith.mulf %14, %13 : vector<8x128xf32>
    %cst_4 = arith.constant 5.000000e-01 : f32
    %16 = vector.broadcast %cst_4 : f32 to vector<8x128xf32>
    %17 = arith.mulf %16, %2 : vector<8x128xf32>
    %18 = math.tanh %17 : vector<8x128xf32>
    %cst_5 = arith.constant 2.000000e+00 : f32
    %19 = vector.broadcast %cst_5 : f32 to vector<8x128xf32>
    %20 = arith.mulf %19, %18 : vector<8x128xf32>
    %cst_6 = arith.constant 5.000000e-01 : f32
    %21 = vector.broadcast %cst_6 : f32 to vector<8x128xf32>
    %22 = arith.mulf %21, %6 : vector<8x128xf32>
    %23 = math.tanh %22 : vector<8x128xf32>
    %cst_7 = arith.constant 2.000000e+00 : f32
    %24 = vector.broadcast %cst_7 : f32 to vector<8x128xf32>
    %25 = arith.mulf %24, %23 : vector<8x128xf32>
    %cst_8 = arith.constant 5.000000e-01 : f32
    %26 = vector.broadcast %cst_8 : f32 to vector<8x128xf32>
    %27 = arith.mulf %26, %4 : vector<8x128xf32>
    %28 = math.tanh %27 : vector<8x128xf32>
    %cst_9 = arith.constant 1.000000e+00 : f32
    %29 = vector.broadcast %cst_9 : f32 to vector<8x128xf32>
    %30 = arith.addf %29, %28 : vector<8x128xf32>
    %cst_10 = arith.constant 5.000000e-01 : f32
    %31 = vector.broadcast %cst_10 : f32 to vector<8x128xf32>
    %32 = arith.mulf %31, %30 : vector<8x128xf32>
    %cst_11 = arith.constant 1.000000e+00 : f32
    %33 = vector.broadcast %cst_11 : f32 to vector<8x128xf32>
    %34 = arith.mulf %33, %32 : vector<8x128xf32>
    %cst_12 = arith.constant 1.702000e+00 : f32
    %35 = vector.broadcast %cst_12 : f32 to vector<8x128xf32>
    %36 = arith.mulf %35, %34 : vector<8x128xf32>
    %37 = arith.subf %20, %25 : vector<8x128xf32>
    %38 = arith.mulf %36, %37 : vector<8x128xf32>
    %cst_13 = arith.constant 1.000000e+00 : f32
    %39 = vector.broadcast %cst_13 : f32 to vector<8x128xf32>
    %40 = arith.subf %39, %15 : vector<8x128xf32>
    %cst_14 = arith.constant 5.000000e-01 : f32
    %41 = vector.broadcast %cst_14 : f32 to vector<8x128xf32>
    %42 = arith.mulf %41, %38 : vector<8x128xf32>
    %43 = math.tanh %42 : vector<8x128xf32>
    %cst_15 = arith.constant 1.000000e+00 : f32
    %44 = vector.broadcast %cst_15 : f32 to vector<8x128xf32>
    %45 = arith.addf %44, %43 : vector<8x128xf32>
    %cst_16 = arith.constant 5.000000e-01 : f32
    %46 = vector.broadcast %cst_16 : f32 to vector<8x128xf32>
    %47 = arith.mulf %46, %45 : vector<8x128xf32>
    %48 = arith.mulf %40, %47 : vector<8x128xf32>
    %49 = arith.addf %15, %48 : vector<8x128xf32>
    %c0_17 = arith.constant 0 : index
    %c0_18 = arith.constant 0 : index
    %50 = vector.load %arg2[%c0_17, %c0_18] : memref<8x128xf32, #tpu.memory_space<vmem>>, vector<8x128xf32>
    tpu.vector_store %arg2[%c0_17, %c0_18], %49 {strides = array<i32>} : memref<8x128xf32, #tpu.memory_space<vmem>>, vector<8x128xf32>,
    return
  }
  func.func @transform_0(%arg0: i32) -> (i32, i32, i32) {
    %c0_i32 = arith.constant 0 : i32
    %c0_i32_0 = arith.constant 0 : i32
    %c0_i32_1 = arith.constant 0 : i32
    return %c0_i32, %arg0, %c0_i32_0 : i32, i32, i32
  }
  func.func @transform_1(%arg0: i32) -> (i32, i32) {
    %c0_i32 = arith.constant 0 : i32
    %c0_i32_0 = arith.constant 0 : i32
    return %arg0, %c0_i32 : i32, i32
  }
}

</mosaic_0001>

<bundles_post_ra>
// kernel: tpu_custom_call.1
= control target key start
LH: loop header
LB: loop body
LE: loop exit
PB: predicated region body
PF: predicated region fallthrough
CT: control target
= control target key end

     0   :  { %6 = vsyncpa [#allocation3], 0  ;;  %s167_s0 = inlined_call_operand.hbm [shape: f32[4,8,128], index: 0, kind: input, shape index: {}]   ;;  %s168_s1 = inlined_call_operand.hbm [shape: f32[8,128], index: 1, kind: output, shape index: {}]  }
   0x1   :  { %7 = vsyncpa [#allocation4], 0  ;;  %s129_s6 = smov [#allocation2]   ;;  %s81_s10 = scalar_lea.hbm %s167_s0, 512 }
   0x2   :  { %s13_s7 = sshll.u32 %s129_s6, 4  ;;  %p82_p0 = scmp.ne.s32.totalorder %s167_s0, %s81_s10  ;;  %s14_s7 = int_to_ptr.vmem [resolvable:$true] %s13_s7 }
   0x3   :  { %p85_p1 = scmp.lt.u32.totalorder %s81_s10, %s167_s0 }
   0x5   :  { %p87_p2 = pnand %p85_p1, %p82_p0 }
   0x7   :  { %90 = shalt.err (!%p87_p2)
}
   0x8   :  { %s91_s15 = scalar_lea.vmem %s14_s7, 512  ;;  %p96_p4 = scmp.lt.s32.totalorder %s14_s7, %s14_s7 }
   0x9   :  { %p92_p3 = scmp.ne.s32.totalorder %s14_s7, %s91_s15  ;;  %p97_p5 = scmp.lt.s32.totalorder %s91_s15, %s91_s15 }
   0xb   :  { %p98_p6 = por %p97_p5, %p96_p4 }
   0xd   :  { %p99_p7 = pnand %p98_p6, %p92_p3 }
   0xf   :  { %102 = shalt.err (!%p99_p7)
}
  0x10   :  { %s130_s16 = smov 128   ;;  %s131_s17 = smov 8  }
  0x11   :  { %19 = dma.hbm_to_vmem [thread:$0]  %s167_s0, 512, %s14_s7, [#allocation3], %s130_s16, %s130_s16, %s131_s17  }
  0x12   :  { %125 = dma.done.wait [#allocation3], 512  }
  0x13   :  { %126 = vsyncadd [#allocation3], 4294966784  ;;  %v23_v0 = vld [vmem:[#allocation2] sm:$0xff]  ;;  %v24_v1 = vld [vmem:[#allocation2 + $0x8] sm:$0xff]  ;;  %s132_s0 = smov [#allocation5]  }
  0x14   :  { %v25_v2 = vld [vmem:[#allocation2 + $0x10] sm:$0xff]  ;;  %v31_v3 = vmul.f32 0.5, %v23_v0  ;;  %v37_v5 = vmul.f32 0.5, %v24_v1  ;;  %v26_v6 = vld [vmem:[#allocation2 + $0x18] sm:$0xff]  ;;  %s58_s20 = sshll.u32 %s132_s0, 4  ;;  %s59_s20 = int_to_ptr.vmem [resolvable:$true] %s58_s20 }
  0x15   :  { %v34_v4 = vmul.f32 0.5, %v25_v2  ;;  %v27_v8 = vmul.f32 0.5, %v26_v6  ;;  %s103_s21 = scalar_lea.vmem %s59_s20, 128  ;;  %p108_p9 = scmp.lt.s32.totalorder %s59_s20, %s59_s20 }
  0x16   :  { %71 = vtanh.f32 %v31_v3  ;;  %p104_p8 = scmp.ne.s32.totalorder %s59_s20, %s103_s21  ;;  %p109_p10 = scmp.lt.s32.totalorder %s103_s21, %s103_s21 }
  0x17   :  { %73 = vtanh.f32 %v34_v4 }
  0x18   :  { %75 = vtanh.f32 %v37_v5  ;;  %p110_p11 = por %p109_p10, %p108_p9 }
  0x19   :  { %77 = vtanh.f32 %v27_v8 }
  0x1a   :  { %p111_p12 = pnand %p110_p11, %p104_p8 }
  0x20   :  { %v72_v7 = vpop.eup %71 }
  0x21   :  { %v74_v9 = vpop.eup %73  ;;  %v33_v10 = vmul.f32 2.0, %v72_v7 }
  0x22   :  { %v76_v11 = vpop.eup %75  ;;  %v36_v12 = vmul.f32 2.0, %v74_v9 }
  0x23   :  { %v39_v13 = vadd.f32 1.0, %v76_v11  ;;  %v78_v19 = vpop.eup %77 }
  0x24   :  { %v42_v15 = vsub.f32 %v33_v10, %v36_v12  ;;  %v29_v20 = vadd.f32 1.0, %v78_v19 }
  0x25   :  { %v40_v14 = vmul.f32 0.5, %v39_v13 }
  0x26   :  { %v30_v21 = vmul.f32 0.5, %v29_v20 }
  0x27   :  { %v41_v16 = vmul.f32 1.702, %v40_v14 }
  0x28   :  { %v44_v23 = vsub.f32 1.0, %v30_v21 }
  0x29   :  { %v43_v17 = vmul.f32 %v42_v15, %v41_v16 }
  0x2b   :  { %v45_v18 = vmul.f32 0.5, %v43_v17 }
  0x2d   :  { %79 = vtanh.f32 %v45_v18 }
  0x37   :  { %v80_v22 = vpop.eup %79 }
  0x38   :  { %v47_v24 = vadd.f32 1.0, %v80_v22 }
  0x3a   :  { %v48_v25 = vmul.f32 0.5, %v47_v24 }
  0x3c   :  { %v49_v26 = vmul.f32 %v48_v25, %v44_v23 }
  0x3e   :  { %v50_v27 = vadd.f32 %v49_v26, %v30_v21 }
  0x40   :  { %51 = vst [vmem:[#allocation5] sm:$0xff] %v50_v27 }
  0x41   :  { %114 = shalt.err (!%p111_p12)
}
  0x42   :  { %s115_s24 = scalar_lea.hbm %s168_s1, 128 }
  0x43   :  { %p116_p13 = scmp.ne.s32.totalorder %s168_s1, %s115_s24  ;;  %p119_p0 = scmp.lt.u32.totalorder %s115_s24, %s168_s1 }
  0x45   :  { %p121_p1 = pnand %p119_p0, %p116_p13 }
  0x47   :  { %124 = shalt.err (!%p121_p1)
}
  0x48   :  { %61 = dma.vmem_to_hbm [thread:$0]  %s59_s20, 128, %s168_s1, [#allocation4]  }
  0x49   :  { %127 = dma.done.wait [#allocation4], 128  }
  0x4a   :  { %128 = vsyncadd [#allocation4], 4294967168 }
  0x4b   :  { %65 = vsyncpa [#allocation3], 1 }
  0x4c   :  { %66 = vsyncpa [#allocation4], 1 }

</bundles_post_ra>
